<compile_context>
chip_gen: v7x
topology: tpu7x:2x2x1
jax: 0.10.0
libtpu: 0.0.40
codegen_flags: <defaults>
</compile_context>

<pallas_src>
import jax
import jax.numpy as jnp
from jax import lax
from jax.experimental import pallas as pl
from jax.experimental.pallas import tpu as pltpu

LAYER_NORM_EPS = 1e-12
PAD_IDX = 1  # RoBERTa padding_idx


def _emb_layernorm_kernel(w_ref, pid_ref, tid_ref, pos_tab_ref, tok_tab_ref,
                          gb_ref, o_ref):
    rows = w_ref.shape[0]
    n_pos = pos_tab_ref.shape[0]
    n_tok = tok_tab_ref.shape[0]

    # Word-embedding rows (gathered in the wrapper), upcast for f32 stats.
    e = w_ref[...].astype(jnp.float32)

    # Fused position-embedding gather: one-hot(ids) @ table on the MXU.
    # Exact (single 1.0 per row, f32 accumulate); MXU is otherwise idle in
    # this bandwidth-bound kernel and the table is a constant VMEM block.
    pid = pid_ref[...]                                     # (rows, 1) int32
    pos_oh = (lax.broadcasted_iota(jnp.int32, (rows, n_pos), 1) == pid)
    e = e + jnp.dot(pos_oh.astype(jnp.float32),
                    pos_tab_ref[...].astype(jnp.float32),
                    preferred_element_type=jnp.float32)

    # Fused token-type gather: type vocab is tiny (1-2 rows) -> unrolled
    # select/accumulate on the VPU (exact).
    tid = tid_ref[...]                                     # (rows, 1) int32
    for v in range(n_tok):
        sel = (tid == v).astype(jnp.float32)               # (rows, 1)
        e = e + sel * tok_tab_ref[v:v + 1, :].astype(jnp.float32)

    # LayerNorm over the hidden (lane) axis, f32 statistics.
    mean = jnp.mean(e, axis=-1, keepdims=True)
    c = e - mean
    var = jnp.mean(c * c, axis=-1, keepdims=True)
    inv = lax.rsqrt(var + LAYER_NORM_EPS)

    gamma = gb_ref[0:1, :].astype(jnp.float32)
    beta = gb_ref[1:2, :].astype(jnp.float32)
    o_ref[...] = (c * inv * gamma + beta).astype(o_ref.dtype)


def tt_embeddings_forward(input_ids, word_emb, pos_emb, tok_emb, gamma, beta,
                          token_type_ids=None, tile_rows=256, out_dtype=None):
    B, S = input_ids.shape
    H = word_emb.shape[1]
    if out_dtype is None:
        out_dtype = word_emb.dtype
    if token_type_ids is None:
        token_type_ids = jnp.zeros((B, S), dtype=jnp.int32)

    # RoBERTa position ids (create_position_ids_from_input_ids).
    mask = (input_ids != PAD_IDX).astype(jnp.int32)
    position_ids = jnp.cumsum(mask, axis=1) * mask + PAD_IDX

    # Word-embedding gather stays as XLA glue (vocab table far too large for
    # VMEM).  TODO(synk): optional manual-DMA gather of word_emb rows inside
    # the kernel would remove the last [T, H] HBM round trip.
    w_rows = jnp.take(word_emb, input_ids.reshape(-1), axis=0)
    pid = position_ids.reshape(-1, 1).astype(jnp.int32)
    tid = token_type_ids.reshape(-1, 1).astype(jnp.int32)

    T = B * S
    # Large row tiles amortize per-step overhead; cdiv grid + padded tail
    # handles arbitrary B*S.  VMEM budget at H=768 f32, tile_rows=256:
    # ~0.75 MiB x (in+out) x 2 buffers + ~1.5 MiB position table,
    # comfortably under the 32 MiB scoped default on v5e/v6e/v7x.
    tile = max(8, (min(tile_rows, ((T + 7) // 8) * 8) // 8) * 8)
    T_pad = pl.cdiv(T, tile) * tile
    if T_pad != T:
        pad = T_pad - T
        w_rows = jnp.pad(w_rows, ((0, pad), (0, 0)))
        pid = jnp.pad(pid, ((0, pad), (0, 0)))   # pad rows get sliced off below
        tid = jnp.pad(tid, ((0, pad), (0, 0)))

    gb = jnp.stack([gamma, beta], axis=0)        # (2, H) constant block

    grid = (T_pad // tile,)
    row_spec = pl.BlockSpec((tile, H), lambda i: (i, 0))
    idx_spec = pl.BlockSpec((tile, 1), lambda i: (i, 0))
    pos_spec = pl.BlockSpec(pos_emb.shape, lambda i: (0, 0))   # whole table
    tok_spec = pl.BlockSpec(tok_emb.shape, lambda i: (0, 0))   # whole table
    gb_spec = pl.BlockSpec((2, H), lambda i: (0, 0))

    # TODO(synk): dropout omitted — inference-mode identity in TtEmbeddings.
    out = pl.pallas_call(
        _emb_layernorm_kernel,
        out_shape=jax.ShapeDtypeStruct((T_pad, H), out_dtype),
        grid_spec=pltpu.PrefetchScalarGridSpec(
            num_scalar_prefetch=0,
            grid=grid,
            in_specs=[row_spec, idx_spec, idx_spec, pos_spec, tok_spec, gb_spec],
            out_specs=row_spec,
        ),
        compiler_params=pltpu.CompilerParams(
            dimension_semantics=("parallel",)),
    )(w_rows, pid, tid, pos_emb, tok_emb, gb)

    return out[:T].reshape(B, S, H)


def _reference(input_ids, word_emb, pos_emb, tok_emb, gamma, beta,
               token_type_ids=None):
    B, S = input_ids.shape
    mask = (input_ids != PAD_IDX).astype(jnp.int32)
    position_ids = jnp.cumsum(mask, axis=1) * mask + PAD_IDX
    if token_type_ids is None:
        token_type_ids = jnp.zeros((B, S), dtype=jnp.int32)
    e = word_emb[input_ids] + pos_emb[position_ids] + tok_emb[token_type_ids]
    mean = jnp.mean(e, axis=-1, keepdims=True)
    var = jnp.mean((e - mean) ** 2, axis=-1, keepdims=True)
    return (e - mean) * lax.rsqrt(var + LAYER_NORM_EPS) * gamma + beta


if __name__ == "__main__":
    # Small, module-consistent shapes; H is lane-dense (multiple of 128).
    B, S, H = 2, 8, 128
    VOCAB, MAX_POS, TYPE_VOCAB = 50, 64, 2

    key = jax.random.PRNGKey(0)
    k_w, k_p, k_t, k_ids, k_tt = jax.random.split(key, 5)

    word_emb = jax.random.normal(k_w, (VOCAB, H), dtype=jnp.float32) * 0.02
    pos_emb = jax.random.normal(k_p, (MAX_POS, H), dtype=jnp.float32) * 0.02
    tok_emb = jax.random.normal(k_t, (TYPE_VOCAB, H), dtype=jnp.float32) * 0.02
    gamma = 1.0 + 0.1 * jax.random.normal(jax.random.PRNGKey(7), (H,), dtype=jnp.float32)
    beta = 0.1 * jax.random.normal(jax.random.PRNGKey(8), (H,), dtype=jnp.float32)

    # Token ids in [2, VOCAB); sprinkle pad tokens to exercise position-id logic.
    input_ids = jax.random.randint(k_ids, (B, S), 2, VOCAB, dtype=jnp.int32)
    input_ids = input_ids.at[0, -1].set(PAD_IDX)
    token_type_ids = jax.random.randint(k_tt, (B, S), 0, TYPE_VOCAB, dtype=jnp.int32)

    out = tt_embeddings_forward(input_ids, word_emb, pos_emb, tok_emb, gamma,
                                beta, token_type_ids=token_type_ids)
    out = jax.block_until_ready(out)
    ref = _reference(input_ids, word_emb, pos_emb, tok_emb, gamma, beta,
                     token_type_ids=token_type_ids)
    assert out.shape == (B, S, H)
    assert jnp.allclose(out, ref, atol=1e-5, rtol=1e-5)

    # Second case: row count not a multiple of 8 exercises the padded-tail path.
    B2, S2 = 3, 11  # T = 33 -> padded to 40 rows internally
    ids2 = jax.random.randint(jax.random.PRNGKey(3), (B2, S2), 2, VOCAB,
                              dtype=jnp.int32)
    ids2 = ids2.at[1, -2:].set(PAD_IDX)
    out2 = jax.block_until_ready(
        tt_embeddings_forward(ids2, word_emb, pos_emb, tok_emb, gamma, beta))
    ref2 = _reference(ids2, word_emb, pos_emb, tok_emb, gamma, beta)
    assert out2.shape == (B2, S2, H)
    assert jnp.allclose(out2, ref2, atol=1e-5, rtol=1e-5)

    print("KERNEL_OK")
</pallas_src>

<mosaic_0001>
module attributes {stable_mosaic.version = 11 : i64} {
  func.func @_emb_layernorm_kernel(%arg0: i32, %arg1: memref<16x128xf32, #tpu.memory_space<vmem>>, %arg2: memref<16x1xi32, #tpu.memory_space<vmem>>, %arg3: memref<16x1xi32, #tpu.memory_space<vmem>>, %arg4: memref<64x128xf32, #tpu.memory_space<vmem>>, %arg5: memref<2x128xf32, #tpu.memory_space<vmem>>, %arg6: memref<2x128xf32, #tpu.memory_space<vmem>>, %arg7: memref<16x128xf32, #tpu.memory_space<vmem>>) attributes {dimension_semantics = [#tpu.dimension_semantics<parallel>], iteration_bounds = array<i64: 1>, scalar_prefetch = 0 : i64, scratch_operands = 0 : i64, tpu.core_type = #tpu.core_type<tc>, window_params = [{transform_indices = @transform_0, window_bounds = array<i64: 16, 128>}, {transform_indices = @transform_1, window_bounds = array<i64: 16, 1>}, {transform_indices = @transform_2, window_bounds = array<i64: 16, 1>}, {pipeline_mode = #tpu.pipeline_mode<synchronous>, transform_indices = @transform_3, window_bounds = array<i64: 64, 128>}, {pipeline_mode = #tpu.pipeline_mode<synchronous>, transform_indices = @transform_4, window_bounds = array<i64: 2, 128>}, {pipeline_mode = #tpu.pipeline_mode<synchronous>, transform_indices = @transform_5, window_bounds = array<i64: 2, 128>}, {transform_indices = @transform_6, window_bounds = array<i64: 16, 128>}]} {
    %c0 = arith.constant 0 : index
    %c0_0 = arith.constant 0 : index
    %0 = vector.load %arg1[%c0, %c0_0] : memref<16x128xf32, #tpu.memory_space<vmem>>, vector<16x128xf32>
    %c0_1 = arith.constant 0 : index
    %c0_2 = arith.constant 0 : index
    %1 = vector.load %arg2[%c0_1, %c0_2] : memref<16x1xi32, #tpu.memory_space<vmem>>, vector<16x1xi32>
    %2 = tpu.iota {dimensions = array<i32: 1>} : vector<16x64xi32>
    %3 = vector.broadcast %1 : vector<16x1xi32> to vector<16x64xi32>
    %4 = arith.cmpi eq, %2, %3 : vector<16x64xi32>
    %5 = arith.extui %4 : vector<16x64xi1> to vector<16x64xi32>
    %6 = arith.sitofp %5 : vector<16x64xi32> to vector<16x64xf32>
    %c0_3 = arith.constant 0 : index
    %c0_4 = arith.constant 0 : index
    %7 = vector.load %arg4[%c0_3, %c0_4] : memref<64x128xf32, #tpu.memory_space<vmem>>, vector<64x128xf32>
    %cst = arith.constant dense<0.000000e+00> : vector<16x128xf32>
    %8 = tpu.matmul %6, %7, %cst {dimension_numbers = #tpu.dot_dimension_numbers<[1], [0], [0], [1], [0, 0, 1, 1], [], []>} : vector<16x64xf32>, vector<64x128xf32>, vector<16x128xf32> -> vector<16x128xf32>
    %9 = arith.addf %0, %8 : vector<16x128xf32>
    %c0_5 = arith.constant 0 : index
    %c0_6 = arith.constant 0 : index
    %10 = vector.load %arg3[%c0_5, %c0_6] : memref<16x1xi32, #tpu.memory_space<vmem>>, vector<16x1xi32>
    %c0_i32 = arith.constant 0 : i32
    %11 = vector.broadcast %c0_i32 : i32 to vector<16x1xi32>
    %12 = arith.cmpi eq, %10, %11 : vector<16x1xi32>
    %13 = arith.extui %12 : vector<16x1xi1> to vector<16x1xi32>
    %14 = arith.sitofp %13 : vector<16x1xi32> to vector<16x1xf32>
    %c0_7 = arith.constant 0 : index
    %c0_8 = arith.constant 0 : index
    %15 = vector.load %arg5[%c0_7, %c0_8] : memref<2x128xf32, #tpu.memory_space<vmem>>, vector<1x128xf32>
    %16 = vector.broadcast %14 : vector<16x1xf32> to vector<16x128xf32>
    %17 = vector.broadcast %15 : vector<1x128xf32> to vector<16x128xf32>
    %18 = arith.mulf %16, %17 : vector<16x128xf32>
    %19 = arith.addf %9, %18 : vector<16x128xf32>
    %c1_i32 = arith.constant 1 : i32
    %20 = vector.broadcast %c1_i32 : i32 to vector<16x1xi32>
    %21 = arith.cmpi eq, %10, %20 : vector<16x1xi32>
    %22 = arith.extui %21 : vector<16x1xi1> to vector<16x1xi32>
    %23 = arith.sitofp %22 : vector<16x1xi32> to vector<16x1xf32>
    %c1 = arith.constant 1 : index
    %c0_9 = arith.constant 0 : index
    %24 = vector.load %arg5[%c1, %c0_9] : memref<2x128xf32, #tpu.memory_space<vmem>>, vector<1x128xf32>
    %25 = vector.broadcast %23 : vector<16x1xf32> to vector<16x128xf32>
    %26 = vector.broadcast %24 : vector<1x128xf32> to vector<16x128xf32>
    %27 = arith.mulf %25, %26 : vector<16x128xf32>
    %28 = arith.addf %19, %27 : vector<16x128xf32>
    %cst_10 = arith.constant dense<0.000000e+00> : vector<16xf32>
    %29 = vector.multi_reduction <add>, %28, %cst_10 [1] : vector<16x128xf32> to vector<16xf32>
    %30 = vector.shape_cast %29 : vector<16xf32> to vector<16x1xf32>
    %cst_11 = arith.constant 1.280000e+02 : f32
    %31 = vector.broadcast %cst_11 : f32 to vector<16x1xf32>
    %32 = arith.divf %30, %31 : vector<16x1xf32>
    %33 = vector.broadcast %32 : vector<16x1xf32> to vector<16x128xf32>
    %34 = arith.subf %28, %33 : vector<16x128xf32>
    %35 = arith.mulf %34, %34 : vector<16x128xf32>
    %cst_12 = arith.constant dense<0.000000e+00> : vector<16xf32>
    %36 = vector.multi_reduction <add>, %35, %cst_12 [1] : vector<16x128xf32> to vector<16xf32>
    %37 = vector.shape_cast %36 : vector<16xf32> to vector<16x1xf32>
    %cst_13 = arith.constant 1.280000e+02 : f32
    %38 = vector.broadcast %cst_13 : f32 to vector<16x1xf32>
    %39 = arith.divf %37, %38 : vector<16x1xf32>
    %cst_14 = arith.constant 9.99999996E-13 : f32
    %40 = vector.broadcast %cst_14 : f32 to vector<16x1xf32>
    %41 = arith.addf %39, %40 : vector<16x1xf32>
    %42 = math.rsqrt %41 : vector<16x1xf32>
    %c0_15 = arith.constant 0 : index
    %c0_16 = arith.constant 0 : index
    %43 = vector.load %arg6[%c0_15, %c0_16] : memref<2x128xf32, #tpu.memory_space<vmem>>, vector<1x128xf32>
    %c1_17 = arith.constant 1 : index
    %c0_18 = arith.constant 0 : index
    %44 = vector.load %arg6[%c1_17, %c0_18] : memref<2x128xf32, #tpu.memory_space<vmem>>, vector<1x128xf32>
    %45 = vector.broadcast %42 : vector<16x1xf32> to vector<16x128xf32>
    %46 = arith.mulf %34, %45 : vector<16x128xf32>
    %47 = vector.broadcast %43 : vector<1x128xf32> to vector<16x128xf32>
    %48 = arith.mulf %46, %47 : vector<16x128xf32>
    %49 = vector.broadcast %44 : vector<1x128xf32> to vector<16x128xf32>
    %50 = arith.addf %48, %49 : vector<16x128xf32>
    %c0_19 = arith.constant 0 : index
    %c0_20 = arith.constant 0 : index
    %51 = vector.load %arg7[%c0_19, %c0_20] : memref<16x128xf32, #tpu.memory_space<vmem>>, vector<16x128xf32>
    tpu.vector_store %arg7[%c0_19, %c0_20], %50 {strides = array<i32>} : memref<16x128xf32, #tpu.memory_space<vmem>>, vector<16x128xf32>,
    return
  }
  func.func @transform_0(%arg0: i32) -> (i32, i32) {
    %c0_i32 = arith.constant 0 : i32
    %c0_i32_0 = arith.constant 0 : i32
    return %arg0, %c0_i32 : i32, i32
  }
  func.func @transform_1(%arg0: i32) -> (i32, i32) {
    %c0_i32 = arith.constant 0 : i32
    %c0_i32_0 = arith.constant 0 : i32
    return %arg0, %c0_i32 : i32, i32
  }
  func.func @transform_2(%arg0: i32) -> (i32, i32) {
    %c0_i32 = arith.constant 0 : i32
    %c0_i32_0 = arith.constant 0 : i32
    return %arg0, %c0_i32 : i32, i32
  }
  func.func @transform_3(%arg0: i32) -> (i32, i32) {
    %c0_i32 = arith.constant 0 : i32
    %c0_i32_0 = arith.constant 0 : i32
    %c0_i32_1 = arith.constant 0 : i32
    return %c0_i32, %c0_i32_0 : i32, i32
  }
  func.func @transform_4(%arg0: i32) -> (i32, i32) {
    %c0_i32 = arith.constant 0 : i32
    %c0_i32_0 = arith.constant 0 : i32
    %c0_i32_1 = arith.constant 0 : i32
    return %c0_i32, %c0_i32_0 : i32, i32
  }
  func.func @transform_5(%arg0: i32) -> (i32, i32) {
    %c0_i32 = arith.constant 0 : i32
    %c0_i32_0 = arith.constant 0 : i32
    %c0_i32_1 = arith.constant 0 : i32
    return %c0_i32, %c0_i32_0 : i32, i32
  }
  func.func @transform_6(%arg0: i32) -> (i32, i32) {
    %c0_i32 = arith.constant 0 : i32
    %c0_i32_0 = arith.constant 0 : i32
    return %arg0, %c0_i32 : i32, i32
  }
}

</mosaic_0001>

<bundles_post_ra>
// kernel: tpu_custom_call.1
= control target key start
LH: loop header
LB: loop body
LE: loop exit
PB: predicated region body
PF: predicated region fallthrough
CT: control target
= control target key end

     0   :  { %11 = vsyncpa [#allocation3], 0  ;;  %s484_s0 = inlined_call_operand.vmem [shape: f32[16,128], index: 0, kind: input, shape index: {}]   ;;  %s485_s1 = inlined_call_operand.vmem [shape: s32[16,1], index: 1, kind: input, shape index: {}]   ;;  %s486_s2 = inlined_call_operand.vmem [shape: s32[16,1], index: 2, kind: input, shape index: {}]   ;;  %s487_s3 = inlined_call_operand.hbm [shape: f32[64,128], index: 3, kind: input, shape index: {}]   ;;  %s488_s4 = inlined_call_operand.vmem [shape: f32[2,128], index: 4, kind: input, shape index: {}]   ;;  %s489_s5 = inlined_call_operand.vmem [shape: f32[2,128], index: 5, kind: input, shape index: {}]   ;;  %s490_s6 = inlined_call_operand.hbm [shape: f32[16,128], index: 6, kind: output, shape index: {}]  }
   0x1   :  { %12 = vsyncpa [#allocation4], 0  ;;  %s383_s21 = smov [#allocation2]   ;;  %s335_s25 = scalar_lea.hbm %s487_s3, 1024 }
   0x2   :  { %s24_s22 = sshll.u32 %s383_s21, 4  ;;  %p336_p0 = scmp.ne.s32.totalorder %s487_s3, %s335_s25  ;;  %s25_s22 = int_to_ptr.vmem [resolvable:$true] %s24_s22 }
   0x3   :  { %p339_p1 = scmp.lt.u32.totalorder %s335_s25, %s487_s3 }
   0x5   :  { %p341_p2 = pnand %p339_p1, %p336_p0 }
   0x7   :  { %344 = shalt.err (!%p341_p2)
}
   0x8   :  { %s345_s30 = scalar_lea.vmem %s25_s22, 1024  ;;  %p350_p4 = scmp.lt.s32.totalorder %s25_s22, %s25_s22 }
   0x9   :  { %p346_p3 = scmp.ne.s32.totalorder %s25_s22, %s345_s30  ;;  %p351_p5 = scmp.lt.s32.totalorder %s345_s30, %s345_s30 }
   0xb   :  { %p352_p6 = por %p351_p5, %p350_p4 }
   0xd   :  { %p353_p7 = pnand %p352_p6, %p346_p3 }
   0xf   :  { %356 = shalt.err (!%p353_p7)
}
  0x10   :  { %s384_s7 = smov 128   ;;  %s385_s8 = smov 8  }
  0x11   :  { %30 = dma.hbm_to_vmem [thread:$0]  %s487_s3, 1024, %s25_s22, [#allocation3], %s384_s7, %s384_s7, %s385_s8  }
  0x12   :  { %379 = dma.done.wait [#allocation3], 1024  }
  0x13   :  { %380 = vsyncadd [#allocation3], 4294966272  ;;  %v386_v0 = vmov 0   ;;  %v40_v1 = vld [vmem:[%s485_s1] sm:$0xff]  ;;  %v57_v3 = vld [vmem:[#allocation2 + $0x8] sm:$0xff]  ;;  %v387_v16 = vmov 0.0   ;;  %v42_v24 = vlaneseq }
  0x14   :  { %319 = vset.pattern.permute.xlu0 %v386_v0  ;;  %320 = vset.pattern.permute.xlu1 %v386_v0  ;;  %v56_v2 = vld [vmem:[#allocation2] sm:$0xff]  ;;  %v58_v4 = vld [vmem:[#allocation2 + $0x10] sm:$0xff]  ;;  %v59_v5 = vld [vmem:[#allocation2 + $0x18] sm:$0xff]  ;;  %vm64_vm4 = vcmask 523264   ;;  %s388_s26 = smov [#allocation5]  }
  0x15   :  { %45 = vperm.xlu0 %319, %v40_v1   ;;  %v41_v6 = vld [vmem:[%s485_s1 + $0x8] sm:$0xff]  ;;  %v297_v7 = vpack.c.bf16 %v57_v3, %v56_v2  ;;  %v301_v8 = vpack.c.bf16 %v59_v5, %v58_v4  ;;  %v60_v9 = vld [vmem:[#allocation2 + $0x20] sm:$0xff]  ;;  %v62_v12 = vld [vmem:[#allocation2 + $0x30] sm:$0xff]  ;;  %v43_v25 = vand.u32 127, %v42_v24  ;;  %s244_s27 = sshll.u32 %s388_s26, 4  ;;  %s245_s27 = int_to_ptr.vmem [resolvable:$true] %s244_s27 }
  0x16   :  { %v61_v10 = vld [vmem:[#allocation2 + $0x28] sm:$0xff]  ;;  %v63_v13 = vld [vmem:[#allocation2 + $0x38] sm:$0xff]  ;;  %v148_v14 = vld [vmem:[%s486_s2] sm:$0xff]  ;;  %s357_s28 = scalar_lea.vmem %s245_s27, 256  ;;  %p362_p9 = scmp.lt.s32.totalorder %s245_s27, %s245_s27 }
  0x17   :  { %298 = vmatprep.subr.bf16.mxu0 %v297_v7  ;;  %v305_v11 = vpack.c.bf16 %v61_v10, %v60_v9  ;;  %v149_v15 = vld [vmem:[%s486_s2 + $0x8] sm:$0xff]  ;;  %vm150_vm0 = vcmp.eq.s32.totalorder %v148_v14, 0  ;;  %vm175_vm2 = vcmp.eq.s32.totalorder %v148_v14, 1  ;;  %v309_v21 = vpack.c.bf16 %v63_v13, %v62_v12  ;;  %v262_v32 = vld [vmem:[%s488_s4] ss:$0 sm:$0xff]  ;;  %p358_p8 = scmp.ne.s32.totalorder %s245_s27, %s357_s28  ;;  %p363_p10 = scmp.lt.s32.totalorder %s357_s28, %s357_s28 }
  0x18   :  { %300 = vmatpush3.bf16.msra.mxu0 %v297_v7  ;;  %vm151_vm1 = vcmp.eq.s32.totalorder %v149_v15, 0  ;;  %vm176_vm3 = vcmp.eq.s32.totalorder %v149_v15, 1  ;;  %v260_v17 = vsel %vm150_vm0, 1.0, %v387_v16  ;;  %v263_v19 = vsel %vm175_vm2, 1.0, %v387_v16  ;;  %v39_v35 = vld [vmem:[%s484_s0 + $0x8] sm:$0xff]  ;;  %v38_v38 = vld [vmem:[%s484_s0] sm:$0xff] }
  0x19   :  { %48 = vperm.xlu0 %319, %v41_v6   ;;  %302 = vmatprep.subr.bf16.mxu0 %v301_v8  ;;  %v261_v18 = vsel %vm151_vm1, 1.0, %v387_v16  ;;  %v264_v20 = vsel %vm176_vm3, 1.0, %v387_v16  ;;  %v265_v41 = vld [vmem:[%s488_s4 + $0x1] ss:$0 sm:$0xff]  ;;  %v266_v3 = vld [vmem:[%s489_s5] ss:$0 sm:$0xff]  ;;  %p364_p11 = por %p363_p10, %p362_p9 }
  0x1a   :  { %v321_v22 = vpack.i.bf16 %v261_v18, %v260_v17  ;;  %v326_v23 = vpack.i.bf16 %v264_v20, %v263_v19  ;;  %v267_v5 = vld [vmem:[%s489_s5 + $0x1] ss:$0 sm:$0xff] }
  0x1b   :  { %p365_p12 = pnand %p364_p11, %p358_p8 }
  0x1c   :  { %304 = vmatpush3.bf16.msra.mxu0 %v301_v8  ;;  %322 = vperm.xlu1 %320, %v321_v22  }
  0x1d   :  { %306 = vmatprep.subr.bf16.mxu0 %v305_v11 }
  0x20   :  { %308 = vmatpush3.bf16.msra.mxu0 %v305_v11  ;;  %327 = vperm.xlu1 %320, %v326_v23  }
  0x21   :  { %310 = vmatprep.subr.bf16.mxu0 %v309_v21 }
  0x24   :  { %312 = vmatpush3.bf16.msra.mxu0 %v309_v21 }
  0x94   :  { %v46_v26 = vpop.permute.xlu0 %45 }
  0x95   :  { %vm50_vm5 = vcmp.eq.s32.totalorder %v43_v25, %v46_v26 }
  0x96   :  { %v256_v27 = vsel %vm50_vm5, 1.0, %v387_v16 }
  0x97   :  { %294 = vmatprep.mubr.msk.f32.mxu0 %vm64_vm4, %v256_v27 }
  0x98   :  { %v49_v28 = vpop.permute.xlu0 %48 }
  0x99   :  { %vm51_vm6 = vcmp.eq.s32.totalorder %v43_v25, %v49_v28 }
  0x9a   :  { %v257_v29 = vsel %vm51_vm6, 1.0, %v387_v16 }
  0x9b   :  { %295 = vmatmul.mubr.msk.f32.vlgmr.msra.gmra.mrb[0].mxu0 %vm64_vm4, %v257_v29  ;;  %v323_v30 = vpop.permute.xlu1 %322 }
  0x9c   :  { %v325_v31 = vunpack.i.h.bf16 %v323_v30  ;;  %v324_v34 = vunpack.i.l.bf16 %v323_v30 }
  0x9e   :  { %v172_v36 = vmul.f32 %v325_v31, %v262_v32  ;;  %v171_v44 = vmul.f32 %v324_v34, %v262_v32 }
  0x9f   :  { %v328_v33 = vpop.permute.xlu1 %327 }
  0xa0   :  { %v330_v37 = vunpack.i.h.bf16 %v328_v33  ;;  %v329_v39 = vunpack.i.l.bf16 %v328_v33 }
  0xa2   :  { %v197_v47 = vmul.f32 %v330_v37, %v265_v41  ;;  %v196_v49 = vmul.f32 %v329_v39, %v265_v41 }
 0x16e   :  { %v296_v40 = vpop.f32.mrb[0].mxu0 }
 0x16f   :  { %v147_v42 = vadd.f32 %v296_v40, %v39_v35  ;;  %v137_v43 = vpop.f32.mrb[1].mxu0 }
 0x170   :  { %v146_v45 = vadd.f32 %v137_v43, %v38_v38 }
 0x171   :  { %v174_v46 = vadd.f32 %v172_v36, %v147_v42 }
 0x172   :  { %v173_v48 = vadd.f32 %v171_v44, %v146_v45 }
 0x173   :  { %v199_v50 = vadd.f32 %v197_v47, %v174_v46 }
 0x174   :  { %v198_v51 = vadd.f32 %v196_v49, %v173_v48 }
 0x175   :  { %202 = vadd.xlane.f32.xlu1 %v199_v50 }
 0x176   :  { %200 = vadd.xlane.f32.xlu0 %v198_v51 }
 0x202   :  { %v203_v52 = vpop.xlane.xlu1 %202 }
 0x203   :  { %v201_v53 = vpop.xlane.xlu0 %200  ;;  %v206_v54 = vmul.f32 0.0078125, %v203_v52 }
 0x204   :  { %v205_v55 = vmul.f32 0.0078125, %v201_v53 }
 0x205   :  { %v208_v57 = vsub.f32 %v199_v50, %v206_v54 }
 0x206   :  { %v207_v56 = vsub.f32 %v198_v51, %v205_v55 }
 0x207   :  { %v210_v59 = vmul.f32 %v208_v57, %v208_v57 }
 0x208   :  { %v209_v58 = vmul.f32 %v207_v56, %v207_v56 }
 0x20a   :  { %211 = vadd.xlane.f32.xlu0 %v209_v58 }
 0x20e   :  { %213 = vadd.xlane.f32.xlu0 %v210_v59 }
 0x297   :  { %v212_v60 = vpop.xlane.xlu0 %211 }
 0x298   :  { %v215_v61 = vmul.f32 0.0078125, %v212_v60 }
 0x29a   :  { %v217_v62 = vadd.f32 1e-12, %v215_v61 }
 0x29b   :  { %v214_v63 = vpop.xlane.xlu0 %213 }
 0x29c   :  { %331 = vrsqrt.f32 %v217_v62  ;;  %v216_v0 = vmul.f32 0.0078125, %v214_v63 }
 0x29e   :  { %v218_v1 = vadd.f32 1e-12, %v216_v0 }
 0x2a0   :  { %333 = vrsqrt.f32 %v218_v1 }
 0x2a6   :  { %v332_v2 = vpop.eup %331 }
 0x2a7   :  { %v223_v4 = vmul.f32 %v332_v2, %v207_v56 }
 0x2a9   :  { %v229_v6 = vmul.f32 %v266_v3, %v223_v4 }
 0x2aa   :  { %v334_v7 = vpop.eup %333 }
 0x2ab   :  { %v224_v8 = vmul.f32 %v334_v7, %v208_v57  ;;  %v235_v9 = vadd.f32 %v267_v5, %v229_v6 }
 0x2ad   :  { %v230_v10 = vmul.f32 %v266_v3, %v224_v8  ;;  %237 = vst [vmem:[#allocation5] sm:$0xff] %v235_v9 }
 0x2af   :  { %v236_v11 = vadd.f32 %v267_v5, %v230_v10 }
 0x2b1   :  { %238 = vst [vmem:[#allocation5 + $0x8] sm:$0xff] %v236_v11 }
 0x2b2   :  { %368 = shalt.err (!%p365_p12)
}
 0x2b3   :  { %s369_s30 = scalar_lea.hbm %s490_s6, 256 }
 0x2b4   :  { %p370_p13 = scmp.ne.s32.totalorder %s490_s6, %s369_s30  ;;  %p373_p0 = scmp.lt.u32.totalorder %s369_s30, %s490_s6 }
 0x2b6   :  { %p375_p1 = pnand %p373_p0, %p370_p13 }
 0x2b8   :  { %378 = shalt.err (!%p375_p1)
}
 0x2b9   :  { %250 = dma.vmem_to_hbm [thread:$0]  %s245_s27, 256, %s490_s6, [#allocation4], %s384_s7, %s384_s7, %s385_s8  }
 0x2ba   :  { %381 = dma.done.wait [#allocation4], 256  }
 0x2bb   :  { %382 = vsyncadd [#allocation4], 4294967040 }
 0x2bc   :  { %254 = vsyncpa [#allocation3], 1 }
 0x2bd   :  { %255 = vsyncpa [#allocation4], 1 }

</bundles_post_ra>
